<compile_context>
chip_gen: v7x
topology: tpu7x:2x2x1
jax: 0.10.0
libtpu: 0.0.40
codegen_flags: <defaults>
</compile_context>

<pallas_src>
import functools

import jax
import jax.numpy as jnp
from jax import lax
from jax.experimental import pallas as pl
from jax.experimental.pallas import tpu as pltpu


def _head_kernel(x_ref, wq_ref, wk_ref, wv_ref, *rest, scale, inv_keep):
    """One batch element: x (T, D) -> out (T, head_size)."""
    if inv_keep is not None:
        keep_ref, o_ref = rest
    else:
        (o_ref,) = rest

    x = x_ref[0]          # (T, D) bf16
    w_q = wq_ref[...]     # (D, H) bf16
    w_k = wk_ref[...]
    w_v = wv_ref[...]

    # Projections on the MXU (bf16 operands, f32 accumulation).
    q = jnp.dot(x, w_q, preferred_element_type=jnp.float32)    # (T, H)
    k = jnp.dot(x, w_k, preferred_element_type=jnp.float32)
    v = jnp.dot(x, w_v, preferred_element_type=jnp.float32)

    # Scores: wei[i, j] = k_i . q_j  (matches the module's `k @ q.transpose(-1, -2)`).
    wei = lax.dot_general(
        k.astype(jnp.bfloat16), q.astype(jnp.bfloat16),
        (((1,), (1,)), ((), ())),
        preferred_element_type=jnp.float32,
    ) * scale                                                   # (T, T) f32

    # Causal mask (keep lower triangle) + numerically-stable softmax over keys.
    t = wei.shape[0]
    row = lax.broadcasted_iota(jnp.int32, (t, t), 0)
    col = lax.broadcasted_iota(jnp.int32, (t, t), 1)
    wei = jnp.where(col <= row, wei, -jnp.inf)
    m = jnp.max(wei, axis=-1, keepdims=True)
    e = jnp.exp(wei - m)
    p = e / jnp.sum(e, axis=-1, keepdims=True)

    # Inverted dropout on the attention probabilities (training mode only).
    if inv_keep is not None:
        p = p * (keep_ref[0] * inv_keep)

    out = jnp.dot(p.astype(jnp.bfloat16), v.astype(jnp.bfloat16),
                  preferred_element_type=jnp.float32)           # (T, H)
    o_ref[0] = out.astype(o_ref.dtype)


def head_forward(x, wq, wk, wv, *, p_drop=0.0, keep_mask=None):
    """Single causal attention head.

    x: (B, T, n_mbed) f32.  wq/wk/wv: (n_mbed, head_size) f32, stored (in, out), i.e. the
    transpose of nn.Linear.weight.  keep_mask: (B, T, T) 0/1 array, required iff p_drop > 0
    (inverted dropout, matching nn.Dropout in training mode; eval mode == identity).
    """
    B, T, D = x.shape
    H = wq.shape[1]
    assert wq.shape == wk.shape == wv.shape == (D, H)
    scale = float(D) ** -0.5      # PyTorch module scales by C**-0.5 with C = n_mbed

    # bf16 operands: MXU-native on v5e/v6e/v7x and half the HBM->VMEM bytes.
    xb = x.astype(jnp.bfloat16)
    wqb = wq.astype(jnp.bfloat16)
    wkb = wk.astype(jnp.bfloat16)
    wvb = wv.astype(jnp.bfloat16)

    use_dropout = float(p_drop) > 0.0
    inputs = [xb, wqb, wkb, wvb]
    in_specs = [
        pl.BlockSpec((1, T, D), lambda b: (b, 0, 0)),   # tokens of batch b
        pl.BlockSpec((D, H), lambda b: (0, 0)),         # W_q (resident in VMEM)
        pl.BlockSpec((D, H), lambda b: (0, 0)),         # W_k
        pl.BlockSpec((D, H), lambda b: (0, 0)),         # W_v
    ]
    if use_dropout:
        assert keep_mask is not None and keep_mask.shape == (B, T, T)
        inputs.append(keep_mask.astype(jnp.float32))
        in_specs.append(pl.BlockSpec((1, T, T), lambda b: (b, 0, 0)))
        inv_keep = 1.0 / (1.0 - float(p_drop))
    else:
        inv_keep = None

    kernel = functools.partial(_head_kernel, scale=scale, inv_keep=inv_keep)

    flops = B * (6 * T * D * H + 4 * T * T * H)
    bytes_accessed = (
        xb.size * 2 + (wqb.size + wkb.size + wvb.size) * 2 + B * T * H * 4
        + (B * T * T * 4 if use_dropout else 0)
    )

    out = pl.pallas_call(
        kernel,
        out_shape=jax.ShapeDtypeStruct((B, T, H), x.dtype),
        grid=(B,),
        in_specs=in_specs,
        out_specs=pl.BlockSpec((1, T, H), lambda b: (b, 0, 0)),
        compiler_params=pltpu.CompilerParams(
            dimension_semantics=("parallel",),
        ),
        cost_estimate=pl.CostEstimate(
            flops=flops, transcendentals=B * T * T, bytes_accessed=bytes_accessed),
    )(*inputs)
    return out


def _reference(x, wq, wk, wv, *, p_drop=0.0, keep_mask=None):
    """Pure-JAX f32 reference matching the PyTorch Head.forward."""
    B, T, C = x.shape
    q = x @ wq
    k = x @ wk
    v = x @ wv
    wei = jnp.einsum("bid,bjd->bij", k, q) * (C ** -0.5)
    causal = jnp.tril(jnp.ones((T, T), dtype=bool))
    wei = jnp.where(causal[None], wei, -jnp.inf)
    wei = jax.nn.softmax(wei, axis=-1)
    if p_drop > 0.0:
        wei = wei * keep_mask / (1.0 - p_drop)
    return jnp.einsum("bij,bjd->bid", wei, v)


if __name__ == "__main__":
    n_mbed = 384          # fixed by the reference module
    head_size = 64        # typical head width (n_mbed / 6 heads)
    B, T = 2, 8           # small batch / sequence (T <= block_size = 256)
    p_drop = 0.2          # module's dropout rate (training mode only)

    key = jax.random.PRNGKey(0)
    kx, kq, kk, kv, kd = jax.random.split(key, 5)
    x = jax.random.normal(kx, (B, T, n_mbed), dtype=jnp.float32)
    lim = 1.0 / (n_mbed ** 0.5)   # nn.Linear default U(-1/sqrt(fan_in), 1/sqrt(fan_in))
    wq = jax.random.uniform(kq, (n_mbed, head_size), jnp.float32, -lim, lim)
    wk = jax.random.uniform(kk, (n_mbed, head_size), jnp.float32, -lim, lim)
    wv = jax.random.uniform(kv, (n_mbed, head_size), jnp.float32, -lim, lim)

    # Eval mode (dropout == identity), matching model.eval() in PyTorch.
    y = jax.block_until_ready(head_forward(x, wq, wk, wv))
    ref = _reference(x, wq, wk, wv)
    assert y.shape == (B, T, head_size)
    err = float(jnp.max(jnp.abs(y - ref)))
    assert jnp.allclose(y, ref, atol=2e-2, rtol=2e-2), f"max abs err {err}"

    # Training mode with an explicit keep mask (deterministic, so directly checkable).
    keep = jax.random.bernoulli(kd, 1.0 - p_drop, (B, T, T)).astype(jnp.float32)
    y_tr = jax.block_until_ready(
        head_forward(x, wq, wk, wv, p_drop=p_drop, keep_mask=keep))
    ref_tr = _reference(x, wq, wk, wv, p_drop=p_drop, keep_mask=keep)
    assert y_tr.shape == (B, T, head_size)
    assert jnp.allclose(y_tr, ref_tr, atol=2e-2, rtol=2e-2)

    print("KERNEL_OK")
</pallas_src>

<mosaic_0001>
module attributes {stable_mosaic.version = 11 : i64} {
  func.func @_head_kernel(%arg0: i32, %arg1: memref<1x8x384xbf16, #tpu.memory_space<vmem>>, %arg2: memref<384x64xbf16, #tpu.memory_space<vmem>>, %arg3: memref<384x64xbf16, #tpu.memory_space<vmem>>, %arg4: memref<384x64xbf16, #tpu.memory_space<vmem>>, %arg5: memref<1x8x64xf32, #tpu.memory_space<vmem>>) attributes {dimension_semantics = [#tpu.dimension_semantics<parallel>], iteration_bounds = array<i64: 2>, scalar_prefetch = 0 : i64, scratch_operands = 0 : i64, tpu.core_type = #tpu.core_type<tc>, window_params = [{transform_indices = @transform_0, window_bounds = array<i64: 1, 8, 384>}, {pipeline_mode = #tpu.pipeline_mode<synchronous>, transform_indices = @transform_1, window_bounds = array<i64: 384, 64>}, {pipeline_mode = #tpu.pipeline_mode<synchronous>, transform_indices = @transform_2, window_bounds = array<i64: 384, 64>}, {pipeline_mode = #tpu.pipeline_mode<synchronous>, transform_indices = @transform_3, window_bounds = array<i64: 384, 64>}, {transform_indices = @transform_4, window_bounds = array<i64: 1, 8, 64>}]} {
    %c0 = arith.constant 0 : index
    %c0_0 = arith.constant 0 : index
    %c0_1 = arith.constant 0 : index
    %0 = vector.load %arg1[%c0, %c0_0, %c0_1] : memref<1x8x384xbf16, #tpu.memory_space<vmem>>, vector<1x8x384xbf16>
    %1 = vector.shape_cast %0 : vector<1x8x384xbf16> to vector<8x384xbf16>
    %c0_2 = arith.constant 0 : index
    %c0_3 = arith.constant 0 : index
    %2 = vector.load %arg2[%c0_2, %c0_3] : memref<384x64xbf16, #tpu.memory_space<vmem>>, vector<384x64xbf16>
    %c0_4 = arith.constant 0 : index
    %c0_5 = arith.constant 0 : index
    %3 = vector.load %arg3[%c0_4, %c0_5] : memref<384x64xbf16, #tpu.memory_space<vmem>>, vector<384x64xbf16>
    %c0_6 = arith.constant 0 : index
    %c0_7 = arith.constant 0 : index
    %4 = vector.load %arg4[%c0_6, %c0_7] : memref<384x64xbf16, #tpu.memory_space<vmem>>, vector<384x64xbf16>
    %cst = arith.constant dense<0.000000e+00> : vector<8x64xf32>
    %5 = tpu.matmul %1, %2, %cst {dimension_numbers = #tpu.dot_dimension_numbers<[1], [0], [0], [1], [0, 0, 1, 1], [], []>} : vector<8x384xbf16>, vector<384x64xbf16>, vector<8x64xf32> -> vector<8x64xf32>
    %cst_8 = arith.constant dense<0.000000e+00> : vector<8x64xf32>
    %6 = tpu.matmul %1, %3, %cst_8 {dimension_numbers = #tpu.dot_dimension_numbers<[1], [0], [0], [1], [0, 0, 1, 1], [], []>} : vector<8x384xbf16>, vector<384x64xbf16>, vector<8x64xf32> -> vector<8x64xf32>
    %cst_9 = arith.constant dense<0.000000e+00> : vector<8x64xf32>
    %7 = tpu.matmul %1, %4, %cst_9 {dimension_numbers = #tpu.dot_dimension_numbers<[1], [0], [0], [1], [0, 0, 1, 1], [], []>} : vector<8x384xbf16>, vector<384x64xbf16>, vector<8x64xf32> -> vector<8x64xf32>
    %8 = arith.truncf %6 : vector<8x64xf32> to vector<8x64xbf16>
    %9 = arith.truncf %5 : vector<8x64xf32> to vector<8x64xbf16>
    %cst_10 = arith.constant dense<0.000000e+00> : vector<8x8xf32>
    %10 = tpu.matmul %8, %9, %cst_10 {dimension_numbers = #tpu.dot_dimension_numbers<[1], [1], [0], [0], [0, 0, 1, 0], [], []>} : vector<8x64xbf16>, vector<8x64xbf16>, vector<8x8xf32> -> vector<8x8xf32>
    %cst_11 = arith.constant 0.0510310382 : f32
    %11 = vector.broadcast %cst_11 : f32 to vector<8x8xf32>
    %12 = arith.mulf %10, %11 : vector<8x8xf32>
    %13 = tpu.iota {dimensions = array<i32: 0>} : vector<8x8xi32>
    %14 = tpu.iota {dimensions = array<i32: 1>} : vector<8x8xi32>
    %15 = arith.cmpi sle, %14, %13 : vector<8x8xi32>
    %cst_12 = arith.constant 0xFF800000 : f32
    %16 = vector.broadcast %cst_12 : f32 to vector<8x8xf32>
    %17 = arith.select %15, %12, %16 : vector<8x8xi1>, vector<8x8xf32>
    %cst_13 = arith.constant dense<0xFF800000> : vector<8xf32>
    %18 = vector.multi_reduction <maximumf>, %17, %cst_13 [1] : vector<8x8xf32> to vector<8xf32>
    %19 = vector.shape_cast %18 : vector<8xf32> to vector<8x1xf32>
    %20 = vector.broadcast %19 : vector<8x1xf32> to vector<8x8xf32>
    %21 = arith.subf %17, %20 : vector<8x8xf32>
    %22 = math.exp %21 : vector<8x8xf32>
    %cst_14 = arith.constant dense<0.000000e+00> : vector<8xf32>
    %23 = vector.multi_reduction <add>, %22, %cst_14 [1] : vector<8x8xf32> to vector<8xf32>
    %24 = vector.shape_cast %23 : vector<8xf32> to vector<8x1xf32>
    %25 = vector.broadcast %24 : vector<8x1xf32> to vector<8x8xf32>
    %26 = arith.divf %22, %25 : vector<8x8xf32>
    %27 = arith.truncf %26 : vector<8x8xf32> to vector<8x8xbf16>
    %28 = arith.truncf %7 : vector<8x64xf32> to vector<8x64xbf16>
    %cst_15 = arith.constant dense<0.000000e+00> : vector<8x64xf32>
    %29 = tpu.matmul %27, %28, %cst_15 {dimension_numbers = #tpu.dot_dimension_numbers<[1], [0], [0], [1], [0, 0, 1, 1], [], []>} : vector<8x8xbf16>, vector<8x64xbf16>, vector<8x64xf32> -> vector<8x64xf32>
    %c0_16 = arith.constant 0 : index
    %c0_17 = arith.constant 0 : index
    %c0_18 = arith.constant 0 : index
    %30 = vector.load %arg5[%c0_16, %c0_17, %c0_18] : memref<1x8x64xf32, #tpu.memory_space<vmem>>, vector<1x8x64xf32>
    %31 = vector.shape_cast %30 : vector<1x8x64xf32> to vector<8x64xf32>
    %32 = vector.shape_cast %29 : vector<8x64xf32> to vector<1x8x64xf32>
    tpu.vector_store %arg5[%c0_16, %c0_17, %c0_18], %32 {strides = array<i32>} : memref<1x8x64xf32, #tpu.memory_space<vmem>>, vector<1x8x64xf32>,
    return
  }
  func.func @transform_0(%arg0: i32) -> (i32, i32, i32) {
    %c0_i32 = arith.constant 0 : i32
    %c0_i32_0 = arith.constant 0 : i32
    %c0_i32_1 = arith.constant 0 : i32
    return %arg0, %c0_i32, %c0_i32_0 : i32, i32, i32
  }
  func.func @transform_1(%arg0: i32) -> (i32, i32) {
    %c0_i32 = arith.constant 0 : i32
    %c0_i32_0 = arith.constant 0 : i32
    %c0_i32_1 = arith.constant 0 : i32
    return %c0_i32, %c0_i32_0 : i32, i32
  }
  func.func @transform_2(%arg0: i32) -> (i32, i32) {
    %c0_i32 = arith.constant 0 : i32
    %c0_i32_0 = arith.constant 0 : i32
    %c0_i32_1 = arith.constant 0 : i32
    return %c0_i32, %c0_i32_0 : i32, i32
  }
  func.func @transform_3(%arg0: i32) -> (i32, i32) {
    %c0_i32 = arith.constant 0 : i32
    %c0_i32_0 = arith.constant 0 : i32
    %c0_i32_1 = arith.constant 0 : i32
    return %c0_i32, %c0_i32_0 : i32, i32
  }
  func.func @transform_4(%arg0: i32) -> (i32, i32, i32) {
    %c0_i32 = arith.constant 0 : i32
    %c0_i32_0 = arith.constant 0 : i32
    %c0_i32_1 = arith.constant 0 : i32
    return %arg0, %c0_i32, %c0_i32_0 : i32, i32, i32
  }
}

</mosaic_0001>

<bundles_post_ra>
// kernel: tpu_custom_call.1
= control target key start
LH: loop header
LB: loop body
LE: loop exit
PB: predicated region body
PF: predicated region fallthrough
CT: control target
= control target key end

     0   :  { %9 = vsyncpa [#allocation3], 0  ;;  %s2059_s0 = inlined_call_operand.vmem [shape: bf16[2,8,384], index: 0, kind: input, shape index: {}]   ;;  %s2060_s1 = inlined_call_operand.vmem [shape: bf16[384,64], index: 1, kind: input, shape index: {}]   ;;  %s2061_s2 = inlined_call_operand.vmem [shape: bf16[384,64], index: 2, kind: input, shape index: {}]   ;;  %s2062_s3 = inlined_call_operand.vmem [shape: bf16[384,64], index: 3, kind: input, shape index: {}]   ;;  %s2063_s4 = inlined_call_operand.hbm [shape: f32[2,8,64], index: 4, kind: output, shape index: {}]  }
   0x1   :  { %11 = vsyncpa [#allocation3 + $0x1], 0  ;;  %s1686_s15 = smov 0   ;;  %s1688_s16 = smov 0  }
   0x2   :  { %s1690_s17 = smov 0   ;;  %s1692_s18 = smov 0  }
   0x3 LB: > { %s1707_s19 = sadd.s32 4294967295, %s1656_s18   ;;  %s1217_s20 = sadd.s32 4294967294, %s1656_s18   ;;  %s1656_s18 = sphi %s1692_s18, %s2069_s18   ;;  %s1652_s17 = sphi %s1690_s17, %s2068_s17   ;;  %s1648_s16 = sphi %s1688_s16, %s2067_s16   ;;  %s1644_s15 = sphi %s1686_s15, %s2066_s15  }
   0x4   : > { %s1711_s21 = sadd.s32 1, %s1656_s18   ;;  %s113_s22 = sadd.s32 1, %s1652_s17 }
   0x5   : > { %s110_s23 = ssub.s32 %s1656_s18, %s1711_s21  ;;  %p123_p0 = scmp.ne.s32.totalorder %s1652_s17, %s1648_s16 }
   0x6   : > { %p111_p1 = scmp.eq.s32.totalorder %s110_s23, 0  ;;  %p124_p2 = scmp.eq.s32.totalorder %s1707_s19, 1 }
   0x7   : > { %p129_p3 = scmp.ne.s32.totalorder %s1648_s16, %s1644_s15  ;;  %p130_p4 = scmp.eq.s32.totalorder %s1217_s20, 1 }
   0x8   : > { %s1722_s24 = scalar_select %p111_p1, %s1652_s17, %s113_s22  }
   0x9   : > { %p1724_p5 = por %p124_p2, %p123_p0  ;;  %p1728_p6 = por %p130_p4, %p129_p3 }
   0xa   : > { %p1220_p7 = scmp.ge.s32.totalorder %s1656_s18, 1  ;;  %p165_p8 = scmp.lt.s32.totalorder %s1656_s18, 3 }
   0xc   : > { %p166_p9 = pnand %p1220_p7, %p165_p8 }
   0xd   : > { %v1515_v0 = vld [vmem:[%s2060_s1 + $0x40] sm:$0xff] (!%p166_p9)   ;;  %v1658_v1 = vmov (!%p166_p9), 0.0   ;;  %v1518_v4 = vld [vmem:[%s2060_s1 + $0x48] sm:$0xff] (!%p166_p9)   ;;  %vm1659_vm0 = vmmov (!%p166_p9), 0   ;;  %v1521_v7 = vld [vmem:[%s2060_s1 + $0x50] sm:$0xff] (!%p166_p9)   ;;  %p191_p10 = scmp.lt.s32.totalorder (!%p166_p9), %s1707_s19, 1 }
   0xe   : > { %169 = sbr.rel (%p166_p9) target bundleno = 1055 (0x41f), region = 36  ;;  %1401 = vmatprep.subr.bf16.mxu1 (!%p166_p9), %v1658_v1  ;;  %v1516_v2 = vld [vmem:[%s2060_s1] sm:$0xff] (!%p166_p9)   ;;  %1304 = vmatprep.subr.bf16.mxu0 (!%p166_p9), %v1515_v0  ;;  %v1519_v5 = vld [vmem:[%s2060_s1 + $0x8] sm:$0xff] (!%p166_p9)   ;;  %v1522_v8 = vld [vmem:[%s2060_s1 + $0x10] sm:$0xff] (!%p166_p9)   ;;  %vm1028_vm1 = vcmask (!%p166_p9), 523264   ;;  %vm1099_vm2 = vcmask (!%p166_p9), 1043456  }
   0xf   : > { %v1517_v3 = vld [vmem:[%s2060_s1 + $0x80] sm:$0xff] (!%p166_p9)   ;;  %1305 = vmatpush3.bf16.msra.mxu0 (!%p166_p9), %v1516_v2  ;;  %1417 = vmatprep.mubr.msk.bf16.mxu1 (!%p166_p9), %vm1659_vm0, %v1658_v1  ;;  %v1520_v6 = vld [vmem:[%s2060_s1 + $0x88] sm:$0xff] (!%p166_p9)   ;;  %v1523_v9 = vld [vmem:[%s2060_s1 + $0x90] sm:$0xff] (!%p166_p9)   ;;  %vm1082_vm4 = vcmask (!%p166_p9), 64512   ;;  %s188_s14 = sand.u32 (!%p166_p9), 1, %s1648_s16   ;;  %s1301_s22 = sshll.u32 (!%p166_p9), %s1707_s19, 7 }
  0x10   : > { %1402 = vmatpush3.bf16.msra.mxu1 (!%p166_p9), %v1517_v3  ;;  %1306 = vmatprep.subr.bf16.mxu0 (!%p166_p9), %v1518_v4  ;;  %v1524_v10 = vld [vmem:[%s2060_s1 + $0x58] sm:$0xff] (!%p166_p9)   ;;  %v1527_v13 = vld [vmem:[%s2060_s1 + $0x60] sm:$0xff] (!%p166_p9)   ;;  %v1530_v16 = vld [vmem:[%s2060_s1 + $0x68] sm:$0xff] (!%p166_p9)   ;;  %s1221_s20 = sshll.u32 (!%p166_p9), %s188_s14, 3  ;;  %s2016_s30 = scalar_lea.hbm (!%p166_p9), %s2063_s4, %s1301_s22 }
  0x11   : > { %1403 = vmatprep.subr.bf16.mxu1 (!%p166_p9), %v1658_v1  ;;  %v1525_v11 = vld [vmem:[%s2060_s1 + $0x18] sm:$0xff] (!%p166_p9)   ;;  %v1528_v14 = vld [vmem:[%s2060_s1 + $0x20] sm:$0xff] (!%p166_p9)   ;;  %v1531_v17 = vld [vmem:[%s2060_s1 + $0x28] sm:$0xff] (!%p166_p9)   ;;  %s190_s27 = scalar_lea.vmem (!%p166_p9), [#allocation2], %s1221_s20  ;;  %s1145_s5 = scalar_lea.sflag (!%p166_p9), [#allocation3], %s188_s14 }
  0x12   : > { %v1526_v12 = vld [vmem:[%s2060_s1 + $0x98] sm:$0xff] (!%p166_p9)   ;;  %v1529_v15 = vld [vmem:[%s2060_s1 + $0xa0] sm:$0xff] (!%p166_p9)   ;;  %v1532_v18 = vld [vmem:[%s2060_s1 + $0xa8] sm:$0xff] (!%p166_p9)  }
  0x13   : > { %1307 = vmatpush3.bf16.msra.mxu0 (!%p166_p9), %v1519_v5  ;;  %v1533_v19 = vld [vmem:[%s2060_s1 + $0x70] sm:$0xff] (!%p166_p9)   ;;  %v1536_v22 = vld [vmem:[%s2060_s1 + $0x78] sm:$0xff] (!%p166_p9)   ;;  %v1541_v27 = vld [vmem:[%s2061_s2 + $0x40] sm:$0xff] (!%p166_p9)  }
  0x14   : > { %1404 = vmatpush3.bf16.msra.mxu1 (!%p166_p9), %v1520_v6  ;;  %1308 = vmatprep.subr.bf16.mxu0 (!%p166_p9), %v1521_v7  ;;  %v1534_v20 = vld [vmem:[%s2060_s1 + $0x30] sm:$0xff] (!%p166_p9)   ;;  %v1537_v25 = vld [vmem:[%s2060_s1 + $0x38] sm:$0xff] (!%p166_p9)   ;;  %v1543_v30 = vld [vmem:[%s2061_s2] sm:$0xff] (!%p166_p9)  }
  0x15   : > { %1405 = vmatprep.subr.bf16.mxu1 %v1658_v1  ;;  %s192_s10 = scalar_select %p191_p10, %s1707_s19, 1  ;;  %v1535_v21 = vld [vmem:[%s2060_s1 + $0xb0] sm:$0xff]   ;;  %v1538_v26 = vld [vmem:[%s2060_s1 + $0xb8] sm:$0xff]   ;;  %v1544_v31 = vld [vmem:[%s2061_s2 + $0x80] sm:$0xff]  }
  0x16   : > { %v1545_v32 = vld [vmem:[%s2061_s2 + $0x48] sm:$0xff]   ;;  %v1548_v35 = vld [vmem:[%s2061_s2 + $0x50] sm:$0xff]   ;;  %v1551_v38 = vld [vmem:[%s2061_s2 + $0x58] sm:$0xff]   ;;  %s1660_s19 = smov [#allocation2]  }
  0x17   : > { %1309 = vmatpush3.bf16.msra.mxu0 %v1522_v8  ;;  %s1473_s23 = smul.u32 12, %s192_s10  ;;  %v1546_v33 = vld [vmem:[%s2061_s2 + $0x8] sm:$0xff]   ;;  %v1549_v36 = vld [vmem:[%s2061_s2 + $0x10] sm:$0xff]   ;;  %v1552_v39 = vld [vmem:[%s2061_s2 + $0x18] sm:$0xff]   ;;  %s1598_s7 = sshll.u32 %s1660_s19, 4  ;;  %s1599_s7 = int_to_ptr.vmem [resolvable:$false] %s1598_s7 }
  0x18   : > { %1406 = vmatpush3.bf16.msra.mxu1 %v1523_v9  ;;  %1310 = vmatprep.subr.bf16.mxu0 %v1524_v10  ;;  %v1547_v34 = vld [vmem:[%s2061_s2 + $0x88] sm:$0xff]   ;;  %v1550_v37 = vld [vmem:[%s2061_s2 + $0x90] sm:$0xff]   ;;  %v1553_v40 = vld [vmem:[%s2061_s2 + $0x98] sm:$0xff]   ;;  %s1600_s8 = scalar_lea.vmem %s1599_s7, 256 }
  0x19   : > { %1407 = vmatprep.subr.bf16.mxu1 %v1658_v1  ;;  %s195_s11 = scalar_lea.vmem %s2059_s0, %s1473_s23  ;;  %v1554_v41 = vld [vmem:[%s2061_s2 + $0x60] sm:$0xff]   ;;  %v1557_v44 = vld [vmem:[%s2061_s2 + $0x68] sm:$0xff]   ;;  %v1560_v47 = vld [vmem:[%s2061_s2 + $0x70] sm:$0xff]   ;;  %s1158_s23 = sshll.u32 %s190_s27, 4  ;;  %s2018_s23 = int_to_ptr.vmem [resolvable:$true] %s1158_s23 }
  0x1a   : > { %v197_v23 = vld [vmem:[%s195_s11] sm:$0xff]  ;;  %v1827_v28 = vld [vmem:[%s195_s11 + $0x8] ss:$0 sps:$4 sm:$0xff]   ;;  %v1561_v48 = vld [vmem:[%s2061_s2 + $0x30] sm:$0xff]   ;;  %s1594_s6 = scalar_lea.vmem %s2018_s23, 128  ;;  %p1601_p0 = scmp.lt.s32.totalorder %s2018_s23, %s1599_s7 }
  0x1b   : > { %1311 = vmatpush3.bf16.msra.mxu0 %v1525_v11  ;;  %v1814_v24 = vcombine.high %v197_v23, %v197_v23  ;;  %v1829_v29 = vcombine.low %v197_v23, %v197_v23  ;;  %v1555_v42 = vld [vmem:[%s2061_s2 + $0x20] sm:$0xff]   ;;  %v1558_v45 = vld [vmem:[%s2061_s2 + $0x28] sm:$0xff]   ;;  %v1562_v49 = vld [vmem:[%s2061_s2 + $0xb0] sm:$0xff]   ;;  %p1595_p11 = scmp.ne.s32.totalorder %s2018_s23, %s1594_s6  ;;  %p1602_p1 = scmp.lt.s32.totalorder %s1600_s8, %s1594_s6 }
  0x1c   : > { %1408 = vmatpush3.bf16.msra.mxu1 %v1526_v12  ;;  %1312 = vmatprep.subr.bf16.mxu0 %v1527_v13  ;;  %v1556_v43 = vld [vmem:[%s2061_s2 + $0xa0] sm:$0xff]   ;;  %v1559_v46 = vld [vmem:[%s2061_s2 + $0xa8] sm:$0xff]   ;;  %v1563_v50 = vld [vmem:[%s2061_s2 + $0x78] sm:$0xff]  }
  0x1d   : > { %1409 = vmatprep.subr.bf16.mxu1 %v1658_v1  ;;  %530 = vmatprep.mubr.bf16.mxu0 %v1814_v24  ;;  %v1564_v51 = vld [vmem:[%s2061_s2 + $0x38] sm:$0xff]   ;;  %v1566_v53 = vld [vmem:[%s2062_s3 + $0x40] sm:$0xff]   ;;  %v1568_v55 = vld [vmem:[%s2062_s3 + $0x48] sm:$0xff]   ;;  %p1596_p12 = pnand %p1595_p11, %p1724_p5  ;;  %p1603_p2 = por %p1602_p1, %p1601_p0 }
  0x1e   : > { %v1565_v52 = vld [vmem:[%s2061_s2 + $0xb8] sm:$0xff]   ;;  %v1567_v54 = vld [vmem:[%s2062_s3] sm:$0xff]   ;;  %v1569_v56 = vld [vmem:[%s2062_s3 + $0x8] sm:$0xff]  }
  0x1f   : > { %1313 = vmatpush3.bf16.msra.mxu0 %v1528_v14  ;;  %v1570_v57 = vld [vmem:[%s2062_s3 + $0x50] sm:$0xff]   ;;  %v1572_v59 = vld [vmem:[%s2062_s3 + $0x58] sm:$0xff]   ;;  %v1574_v61 = vld [vmem:[%s2062_s3 + $0x60] sm:$0xff]   ;;  %p1597_p13 = pneg %p1596_p12 }
  0x20   : > { %1410 = vmatpush3.bf16.msra.mxu1 %v1529_v15  ;;  %1314 = vmatprep.subr.bf16.mxu0 %v1530_v16  ;;  %v1571_v58 = vld [vmem:[%s2062_s3 + $0x10] sm:$0xff]   ;;  %v1573_v60 = vld [vmem:[%s2062_s3 + $0x18] sm:$0xff]   ;;  %v1575_v62 = vld [vmem:[%s2062_s3 + $0x20] sm:$0xff]  }
  0x21   : > { %1411 = vmatprep.subr.bf16.mxu1 %v1658_v1  ;;  %v1576_v63 = vld [vmem:[%s2062_s3 + $0x68] sm:$0xff]   ;;  %v1578_v2 = vld [vmem:[%s2062_s3 + $0x70] sm:$0xff]   ;;  %v1580_v4 = vld [vmem:[%s2062_s3 + $0x78] sm:$0xff]   ;;  %p1604_p3 = pnand %p1603_p2, %p1597_p13 }
  0x22   : > { %v1577_v0 = vld [vmem:[%s2062_s3 + $0x28] sm:$0xff]   ;;  %v1579_v3 = vld [vmem:[%s2062_s3 + $0x30] sm:$0xff]   ;;  %v1581_v5 = vld [vmem:[%s2062_s3 + $0x38] sm:$0xff]  }
  0x23   : > { %1315 = vmatpush3.bf16.msra.mxu0 %v1531_v17  ;;  %v1582_v6 = vld [vmem:[%s2062_s3 + $0x80] sm:$0xff]   ;;  %v1583_v7 = vld [vmem:[%s2062_s3 + $0x88] sm:$0xff]   ;;  %v1584_v8 = vld [vmem:[%s2062_s3 + $0x90] sm:$0xff]  }
  0x24   : > { %1412 = vmatpush3.bf16.msra.mxu1 %v1532_v18  ;;  %1316 = vmatprep.subr.bf16.mxu0 %v1533_v19  ;;  %v1585_v9 = vld [vmem:[%s2062_s3 + $0x98] sm:$0xff]   ;;  %v1586_v10 = vld [vmem:[%s2062_s3 + $0xa0] sm:$0xff]   ;;  %v1587_v11 = vld [vmem:[%s2062_s3 + $0xa8] sm:$0xff]  }
  0x25   : > { %1413 = vmatprep.subr.bf16.mxu1 %v1658_v1  ;;  %v1588_v12 = vld [vmem:[%s2062_s3 + $0xb0] sm:$0xff]   ;;  %v1589_v13 = vld [vmem:[%s2062_s3 + $0xb8] sm:$0xff]  }
  0x27   : > { %1317 = vmatpush3.bf16.msra.mxu0 %v1534_v20 }
  0x28   : > { %1414 = vmatpush3.bf16.msra.mxu1 %v1535_v21  ;;  %1318 = vmatprep.subr.bf16.mxu0 %v1536_v22 }
  0x29   : > { %1415 = vmatprep.subr.bf16.mxu1 %v1658_v1 }
  0x2b   : > { %1319 = vmatpush3.bf16.msra.mxu0 %v1537_v25 }
  0x2c   : > { %1416 = vmatpush3.bf16.msra.mxu1 %v1538_v26  ;;  %1335 = vmatprep.subr.bf16.mxu0 %v1541_v27 }
  0x2d   : > { %1421 = vmatprep.subr.bf16.mxu1 %v1658_v1 }
  0x2e   : > { %531 = vmatmul.mubr.bf16.vlgmr.msra.gmra.mrb[0].mxu0 %v1829_v29 }
  0x2f   : > { %1418 = vmatmul.mubr.bf16.vlgmr.msra.gmra.mrb[0].mxu1 %v1827_v28  ;;  %1336 = vmatpush3.bf16.msra.mxu0 %v1543_v30 }
  0x30   : > { %1422 = vmatpush3.bf16.msra.mxu1 %v1544_v31  ;;  %1337 = vmatprep.subr.bf16.mxu0 %v1545_v32 }
  0x31   : > { %1423 = vmatprep.subr.bf16.mxu1 %v1658_v1  ;;  %754 = vmatprep.mubr.bf16.mxu0 %v1814_v24 }
  0x32   : > { %1437 = vmatprep.mubr.msk.bf16.mxu1 %vm1659_vm0, %v1658_v1 }
  0x33   : > { %1338 = vmatpush3.bf16.msra.mxu0 %v1546_v33 }
  0x34   : > { %1424 = vmatpush3.bf16.msra.mxu1 %v1547_v34  ;;  %1339 = vmatprep.subr.bf16.mxu0 %v1548_v35 }
  0x35   : > { %1425 = vmatprep.subr.bf16.mxu1 %v1658_v1 }
  0x37   : > { %1340 = vmatpush3.bf16.msra.mxu0 %v1549_v36 }
  0x38   : > { %1426 = vmatpush3.bf16.msra.mxu1 %v1550_v37  ;;  %1341 = vmatprep.subr.bf16.mxu0 %v1551_v38 }
  0x39   : > { %1427 = vmatprep.subr.bf16.mxu1 %v1658_v1 }
  0x3b   : > { %1342 = vmatpush3.bf16.msra.mxu0 %v1552_v39 }
  0x3c   : > { %1428 = vmatpush3.bf16.msra.mxu1 %v1553_v40  ;;  %1343 = vmatprep.subr.bf16.mxu0 %v1554_v41 }
  0x3d   : > { %1429 = vmatprep.subr.bf16.mxu1 %v1658_v1 }
  0x3f   : > { %1344 = vmatpush3.bf16.msra.mxu0 %v1555_v42 }
  0x40   : > { %1430 = vmatpush3.bf16.msra.mxu1 %v1556_v43  ;;  %1345 = vmatprep.subr.bf16.mxu0 %v1557_v44 }
  0x41   : > { %1431 = vmatprep.subr.bf16.mxu1 %v1658_v1 }
  0x43   : > { %1346 = vmatpush3.bf16.msra.mxu0 %v1558_v45 }
  0x44   : > { %1432 = vmatpush3.bf16.msra.mxu1 %v1559_v46  ;;  %1347 = vmatprep.subr.bf16.mxu0 %v1560_v47 }
  0x45   : > { %1433 = vmatprep.subr.bf16.mxu1 %v1658_v1 }
  0x47   : > { %1348 = vmatpush3.bf16.msra.mxu0 %v1561_v48  ;;  %v1076_v48 = vlaneseq }
  0x48   : > { %1434 = vmatpush3.bf16.msra.mxu1 %v1562_v49  ;;  %1349 = vmatprep.subr.bf16.mxu0 %v1563_v50 }
  0x49   : > { %1435 = vmatprep.subr.bf16.mxu1 %v1658_v1  ;;  %v1077_v49 = vshrl.u32 %v1076_v48, 7  ;;  %v1079_v50 = vand.u32 127, %v1076_v48 }
  0x4b   : > { %1350 = vmatpush3.bf16.msra.mxu0 %v1564_v51  ;;  %vm1080_vm3 = vcmp.le.s32.totalorder %v1079_v50, %v1077_v49 }
  0x4c   : > { %1436 = vmatpush3.bf16.msra.mxu1 %v1565_v52  ;;  %1366 = vmatprep.subr.bf16.mxu0 %v1566_v53 }
  0x4d   : > { %1441 = vmatprep.subr.bf16.mxu1 %v1658_v1 }
  0x4e   : > { %755 = vmatmul.mubr.bf16.vlgmr.msra.gmra.mrb[4].mxu0 %v1829_v29 }
  0x4f   : > { %1438 = vmatmul.mubr.bf16.vlgmr.msra.gmra.mrb[4].mxu1 %v1827_v28  ;;  %1367 = vmatpush3.bf16.msra.mxu0 %v1567_v54 }
  0x50   : > { %1368 = vmatprep.subr.bf16.mxu0 %v1568_v55  ;;  %978 = vmatprep.mubr.bf16.mxu0 %v1814_v24 }
  0x51   : > { %1457 = vmatprep.mubr.msk.bf16.mxu1 %vm1659_vm0, %v1658_v1  ;;  %1442 = vmatpush3.bf16.msra.mxu1 %v1582_v6 }
  0x52   : > { %1443 = vmatprep.subr.bf16.mxu1 %v1658_v1 }
  0x53   : > { %1369 = vmatpush3.bf16.msra.mxu0 %v1569_v56 }
  0x54   : > { %1370 = vmatprep.subr.bf16.mxu0 %v1570_v57 }
  0x55   : > { %1444 = vmatpush3.bf16.msra.mxu1 %v1583_v7 }
  0x56   : > { %1445 = vmatprep.subr.bf16.mxu1 %v1658_v1 }
  0x57   : > { %1371 = vmatpush3.bf16.msra.mxu0 %v1571_v58 }
  0x58   : > { %1372 = vmatprep.subr.bf16.mxu0 %v1572_v59 }
  0x59   : > { %1446 = vmatpush3.bf16.msra.mxu1 %v1584_v8 }
  0x5a   : > { %1447 = vmatprep.subr.bf16.mxu1 %v1658_v1 }
  0x5b   : > { %1373 = vmatpush3.bf16.msra.mxu0 %v1573_v60 }
  0x5c   : > { %1374 = vmatprep.subr.bf16.mxu0 %v1574_v61 }
  0x5d   : > { %1448 = vmatpush3.bf16.msra.mxu1 %v1585_v9 }
  0x5e   : > { %1449 = vmatprep.subr.bf16.mxu1 %v1658_v1 }
  0x5f   : > { %1375 = vmatpush3.bf16.msra.mxu0 %v1575_v62 }
  0x60   : > { %1376 = vmatprep.subr.bf16.mxu0 %v1576_v63 }
  0x61   : > { %1450 = vmatpush3.bf16.msra.mxu1 %v1586_v10 }
  0x62   : > { %1451 = vmatprep.subr.bf16.mxu1 %v1658_v1 }
  0x63   : > { %1377 = vmatpush3.bf16.msra.mxu0 %v1577_v0 }
  0x64   : > { %1378 = vmatprep.subr.bf16.mxu0 %v1578_v2 }
  0x65   : > { %1452 = vmatpush3.bf16.msra.mxu1 %v1587_v11 }
  0x66   : > { %1453 = vmatprep.subr.bf16.mxu1 %v1658_v1 }
  0x67   : > { %1379 = vmatpush3.bf16.msra.mxu0 %v1579_v3 }
  0x68   : > { %1380 = vmatprep.subr.bf16.mxu0 %v1580_v4 }
  0x69   : > { %1454 = vmatpush3.bf16.msra.mxu1 %v1588_v12 }
  0x6a   : > { %1455 = vmatprep.subr.bf16.mxu1 %v1658_v1 }
  0x6b   : > { %1381 = vmatpush3.bf16.msra.mxu0 %v1581_v5 }
  0x6c   : > { %1461 = vmatprep.subr.bf16.mxu0 %v1658_v1 }
  0x6d   : > { %1456 = vmatpush3.bf16.msra.mxu1 %v1589_v13 }
  0x6e   : > { %979 = vmatmul.mubr.bf16.vlgmr.msra.gmra.mrb[8].mxu0 %v1829_v29  ;;  %1467 = vmatprep.subr.bf16.mxu1 %v1658_v1 }
  0x6f   : > { %1463 = vmatprep.mubr.msk.bf16.mxu0 %vm1659_vm0, %v1658_v1 }
  0x70   : > { %1458 = vmatmul.mubr.bf16.vlgmr.msra.gmra.mrb[8].mxu1 %v1827_v28 }
  0x71   : > { %1469 = vmatprep.mubr.msk.bf16.mxu1 %vm1659_vm0, %v1658_v1 }
 0x101   : > { %v1320_v14 = vpop.f32.mrb[0].mxu0 }
 0x102   : > { %v1321_v15 = vpop.f32.mrb[1].mxu0  ;;  %v572_v16 = vpop.f32.mrb[0].mxu1 }
 0x103   : > { %v1322_v17 = vadd.f32 %v1321_v15, %v1320_v14  ;;  %v1323_v18 = vpop.f32.mrb[2].mxu0  ;;  %v1419_v19 = vpop.f32.mrb[1].mxu1 }
 0x104   : > { %v1324_v20 = vpop.f32.mrb[3].mxu0  ;;  %v575_v21 = vpop.f32.mrb[2].mxu1 }
 0x105   : > { %v573_v22 = vadd.f32 %v1322_v17, %v572_v16  ;;  %v1420_v23 = vpop.f32.mrb[3].mxu1 }
 0x107   : > { %v1027_v24 = vpack.c.bf16 %v573_v22, %v573_v22 }
 0x109   : > { %v1033_v25 = vsel %vm1028_vm1, %v1027_v24, 0 }
 0x10a   : > { %1462 = vmatpush3.bf16.xpose.msra.mxu0 %v1033_v25 }
 0x121   : > { %v1351_v26 = vpop.f32.mrb[4].mxu0 }
 0x122   : > { %v796_v27 = vpop.f32.mrb[4].mxu1  ;;  %v1352_v28 = vpop.f32.mrb[5].mxu0 }
 0x123   : > { %v1353_v29 = vadd.f32 %v1352_v28, %v1351_v26  ;;  %v1439_v1 = vpop.f32.mrb[5].mxu1  ;;  %v1354_v30 = vpop.f32.mrb[6].mxu0 }
 0x124   : > { %v799_v31 = vpop.f32.mrb[6].mxu1  ;;  %v1355_v32 = vpop.f32.mrb[7].mxu0 }
 0x125   : > { %v797_v33 = vadd.f32 %v1353_v29, %v796_v27  ;;  %v1440_v34 = vpop.f32.mrb[7].mxu1 }
 0x127   : > { %v1026_v35 = vpack.c.bf16 %v797_v33, %v797_v33 }
 0x129   : > { %1464 = vmatmul.mubr.msk.bf16.vlgmr.msra.gmra.mrb[12].mxu0 %vm1028_vm1, %v1026_v35 }
 0x141   : > { %v1382_v36 = vpop.f32.mrb[8].mxu0 }
 0x142   : > { %v1383_v37 = vpop.f32.mrb[9].mxu0 }
 0x143   : > { %v1384_v38 = vadd.f32 %v1383_v37, %v1382_v36  ;;  %v1385_v39 = vpop.f32.mrb[10].mxu0  ;;  %v1020_v41 = vpop.f32.mrb[8].mxu1 }
 0x144   : > { %v1386_v40 = vpop.f32.mrb[11].mxu0  ;;  %v1459_v43 = vpop.f32.mrb[9].mxu1 }
 0x145   : > { %v1021_v42 = vadd.f32 %v1384_v38, %v1020_v41  ;;  %v1023_v44 = vpop.f32.mrb[10].mxu1 }
 0x146   : > { %v1460_v46 = vpop.f32.mrb[11].mxu1 }
 0x147   : > { %v1095_v45 = vpack.c.bf16 %v1021_v42, %v1021_v42 }
 0x149   : > { %v1101_v47 = vsel %vm1099_vm2, %v1095_v45, 0 }
 0x14a   : > { %1468 = vmatpush3.bf16.msra.mxu1 %v1101_v47 }
 0x1fc   : > { %v1069_v51 = vpop.f32.mrb[12].mxu0 }
 0x1fd   : > { %v1075_v52 = vmul.f32 0.05103104, %v1069_v51  ;;  %v1465_v53 = vpop.f32.mrb[13].mxu0 }
 0x1fe   : > { %v1072_v54 = vpop.f32.mrb[14].mxu0 }
 0x1ff   : > { %v1466_v55 = vpop.f32.mrb[15].mxu0  ;;  %v1081_v56 = vsel %vm1080_vm3, %v1075_v52, -inf }
 0x200   : > { %v1083_v57 = vsel %vm1082_vm4, %v1081_v56, -inf }
 0x201   : > { %1084 = vmax.xlane.f32.xlu0 %v1083_v57 }
 0x28e   : > { %v1085_v58 = vpop.xlane.xlu0 %1084 }
 0x28f   : > { %v1086_v59 = vsub.f32 %v1081_v56, %v1085_v58 }
 0x291   : > { %v1087_v60 = vmul.f32 1.442695, %v1086_v59 }
 0x293   : > { %1590 = vpow2.f32 %v1087_v60 }
 0x29d   : > { %v1591_v61 = vpop.eup %1590 }
 0x29e   : > { %v1089_v62 = vsel %vm1082_vm4, %v1591_v61, 0.0 }
 0x29f   : > { %1090 = vadd.xlane.f32.xlu0 %v1089_v62 }
 0x32c   : > { %v1091_v63 = vpop.xlane.xlu0 %1090 }
 0x32d   : > { %1592 = vrcp.f32 %v1091_v63 }
 0x337   : > { %v1593_v0 = vpop.eup %1592 }
 0x338   : > { %v1093_v2 = vmul.f32 %v1593_v0, %v1591_v61 }
 0x33a   : > { %v1094_v3 = vpack.c.bf16 %v1093_v2, %v1093_v2 }
 0x33c   : > { %1470 = vmatmul.mubr.msk.bf16.vlgmr.msra.gmra.mrb[12].mxu1 %vm1082_vm4, %v1094_v3 }
 0x40f   : > { %v1137_v4 = vpop.f32.mrb[12].mxu1 }
 0x410   : > { %1143 = vst.msk [vmem:[%s190_s27] sm:$0xff] %vm1028_vm1, %v1137_v4  ;;  %v1471_v5 = vpop.f32.mrb[13].mxu1 }
 0x411   : > { %v1140_v6 = vpop.f32.mrb[14].mxu1 }
 0x412   : > { %1607 = shalt.err (!%p1604_p3)
}
 0x413   : > { %s1608_s9 = scalar_lea.hbm %s2016_s30, 128  ;;  %s1612_s12 = scalar_lea.hbm %s2063_s4, 256 }
 0x414   : > { %p1609_p4 = scmp.ne.s32.totalorder %s2016_s30, %s1608_s9  ;;  %p1613_p9 = scmp.lt.u32.totalorder %s2016_s30, %s2063_s4 }
 0x415   : > { %p1614_p10 = scmp.lt.u32.totalorder %s1612_s12, %s1608_s9  ;;  %p1616_p12 = scmp.lt.u32.totalorder %s1608_s9, %s2016_s30 }
 0x416   : > { %p1610_p7 = pnand %p1609_p4, %p1724_p5 }
 0x417   : > { %p1615_p11 = por %p1614_p10, %p1613_p9 }
 0x418   : > { %p1611_p8 = pneg %p1610_p7 }
 0x419   : > { %p1617_p13 = por %p1616_p12, %p1615_p11 }
 0x41b   : > { %p1618_p0 = pnand %p1617_p13, %p1611_p8 }
 0x41d   : > { %1621 = shalt.err (!%p1618_p0)
}
 0x41e   : > { %1474 = dma.vmem_to_hbm [thread:$0]  (%p1724_p5), %s2018_s23, 128, %s2016_s30, %s1145_s5   ;;  %v1472_v7 = vpop.f32.mrb[15].mxu1 }
 0x41f PF: > { %p1480_p1 = scmp.ge.s32.totalorder %s1656_s18, 2  ;;  %s1170_s20 = sand.u32 1, %s1644_s15  }
 0x420   : > { %s1171_s22 = scalar_lea.sflag [#allocation3], %s1170_s20 }
 0x421   : > { %p1477_p2 = pnand %p1480_p1, %p1728_p6 }
 0x423   : > { %1639 = dma.done.wait (!%p1477_p2), %s1171_s22, 128  }
 0x424   : > { %1641 = vsyncadd (!%p1477_p2), %s1171_s22, 4294967168  ;;  %p14_p3 = scmp.ge.s32.totalorder %s1711_s21, 4   ;;  %s2066_s15 = smov %s1648_s16 }
 0x425   : > { %s2067_s16 = smov %s1652_s17  ;;  %s2068_s17 = smov %s1722_s24 }
 0x426   : > { %s2069_s18 = smov %s1711_s21  ;;  %16 = sbr.rel (!%p14_p3) target bundleno = 3 (0x3), region = 71 }
 0x42d   :  { %1176 = vsyncpa [#allocation3], 1 }
 0x42e   :  { %1178 = vsyncpa [#allocation3 + $0x1], 1 }

</bundles_post_ra>
